<compile_context>
chip_gen: v6e
topology: v6e:2x2x1
jax: 0.10.0
libtpu: 0.0.40
codegen_flags: <defaults>
</compile_context>

<pallas_src>
import functools

import jax
import jax.numpy as jnp
from jax import lax
from jax.experimental import pallas as pl
from jax.experimental.pallas import tpu as pltpu


def _mlp_kernel(num_layers, x_ref, *refs):
    """refs = (w0, b0, w1, b1, ..., w_{L-1}, b_{L-1}, out_ref).

    x_ref : [tile_b, in_dim]   input tile in native layout
    w_l   : [out_l, in_l]      PyTorch nn.Linear layout
    b_l   : [out_l, 1]         broadcasts across the lane (batch) axis
    out   : [out_dim, tile_b]  batch on lanes -> lane-dense stores
    """
    out_ref = refs[-1]
    x = x_ref[...]                      # native dtype feeds the MXU directly
    w0 = refs[0][...]
    b0 = refs[1][...].astype(jnp.float32)
    # Layer 0: contract the feature axis of BOTH operands,
    # [out0, in] x [tile_b, in] -> [out0, tile_b].  No materialized transpose
    # of x; the result is already in batch-on-lanes layout.
    h = lax.dot_general(
        w0, x,
        dimension_numbers=(((1,), (1,)), ((), ())),
        preferred_element_type=jnp.float32,
    ) + b0

    for l in range(1, num_layers):
        h = jnp.tanh(h)                 # EUP slot, effectively free
        w = refs[2 * l][...]
        b = refs[2 * l + 1][...].astype(jnp.float32)
        # Keep a bf16 MXU path if the weights are bf16.
        h = jnp.dot(w, h.astype(w.dtype), preferred_element_type=jnp.float32) + b

    out_ref[...] = h.astype(out_ref.dtype)


def _choose_tile_b(B):
    """Batch tile: sublane rows of the x block / lane columns of the output."""
    if B <= 1024:
        return B                        # one full-extent block, no constraints
    cap = 16384                         # ~1 MiB f32 x tile; trivially fits VMEM
    # Keep >=2 grid steps (v7x has 2 TensorCores); 128-aligned because
    # non-full-extent lane blocks (the output) must be multiples of 128.
    half = -(-B // 2)
    half = -(-half // 128) * 128
    return min(cap, half)


def mlp_actor_forward(x, weights, biases, *, tile_b=None):
    """Pallas implementation of MLPActor.forward.

    x:       [B, input_dim]
    weights: list of [out_dim_l, in_dim_l] arrays (PyTorch nn.Linear layout)
    biases:  list of [out_dim_l, 1] arrays
    """
    assert len(weights) == len(biases) and len(weights) >= 1
    B, in_dim = x.shape
    out_dim = weights[-1].shape[0]
    num_layers = len(weights)

    if tile_b is None:
        tile_b = _choose_tile_b(B)
    if tile_b < B:
        # Non-full-extent lane blocks (output) must be 128-aligned.
        assert tile_b % 128 == 0, "tile_b must be a multiple of 128 when tiling"

    grid_b = pl.cdiv(B, tile_b)

    flat_params = []
    for w, b in zip(weights, biases):
        flat_params.append(w)
        flat_params.append(b)

    kernel = functools.partial(_mlp_kernel, num_layers)

    itemsize = x.dtype.itemsize
    param_bytes = int(sum(p.size * p.dtype.itemsize for p in flat_params))
    flops = int(2 * B * sum(w.shape[0] * w.shape[1] for w in weights))
    transcendentals = int(B * sum(w.shape[0] for w in weights[:-1]))
    bytes_accessed = int(B * (in_dim + out_dim) * itemsize + param_bytes)

    # VMEM budget: double-buffered x/out tiles + per-layer [feat, tile_b] f32
    # intermediates + (at most double-buffered) params + headroom.  Stays well
    # under v7x's 64 MiB physical VMEM.
    max_feat = max([in_dim] + [w.shape[0] for w in weights])
    io_tile_bytes = tile_b * (in_dim + out_dim) * itemsize
    inter_bytes = num_layers * max_feat * tile_b * 4
    vmem_bytes = int(min(2 * 2 * io_tile_bytes + inter_bytes + 2 * param_bytes
                         + (4 << 20), 48 << 20))

    out_shape = jax.ShapeDtypeStruct((out_dim, B), x.dtype)
    x_spec = pl.BlockSpec((tile_b, in_dim), lambda i: (i, 0))
    out_specs = pl.BlockSpec((out_dim, tile_b), lambda i: (0, i))

    def run(single_buffer_params):
        in_specs = [x_spec]
        for p in flat_params:
            if single_buffer_params:
                # Grid-invariant params: constant index_map, drop the dead
                # second buffer and its DMA/semaphore bookkeeping.
                spec = pl.BlockSpec(p.shape, lambda i: (0, 0),
                                    pipeline_mode=pl.Buffered(1))
            else:
                spec = pl.BlockSpec(p.shape, lambda i: (0, 0))
            in_specs.append(spec)
        return pl.pallas_call(
            kernel,
            out_shape=out_shape,
            grid=(grid_b,),
            in_specs=in_specs,
            out_specs=out_specs,
            compiler_params=pltpu.CompilerParams(
                dimension_semantics=("parallel",),
                vmem_limit_bytes=vmem_bytes,
            ),
            cost_estimate=pl.CostEstimate(
                flops=flops,
                transcendentals=transcendentals,
                bytes_accessed=bytes_accessed,
            ),
        )(x, *flat_params)

    try:
        outT = run(single_buffer_params=True)
    except Exception:
        # Fallback if this jax build rejects pipeline_mode / Buffered(1).
        outT = run(single_buffer_params=False)

    # out_dim is tiny (typically 1), so this transpose is effectively free.
    return outT.T  # [B, out_dim]


def init_mlp_actor_params(key, num_layers, input_dim, hidden_dim, output_dim):
    """Synthetic init matching MLPActor.__init__ (nn.Linear) shapes.

    Weights are [out, in] (PyTorch layout); biases are [out, 1].
    """
    if num_layers < 1:
        raise ValueError("number of layers should be positive!")
    dims = (
        [input_dim, output_dim]
        if num_layers == 1
        else [input_dim] + [hidden_dim] * (num_layers - 1) + [output_dim]
    )
    weights, biases = [], []
    for l in range(num_layers):
        key, kw, kb = jax.random.split(key, 3)
        fan_in, fan_out = dims[l], dims[l + 1]
        bound = 1.0 / jnp.sqrt(fan_in)
        weights.append(
            jax.random.uniform(kw, (fan_out, fan_in), jnp.float32, -bound, bound)
        )
        biases.append(
            jax.random.uniform(kb, (fan_out, 1), jnp.float32, -bound, bound)
        )
    return weights, biases


def mlp_actor_reference(x, weights, biases):
    """Plain-JAX reference mirroring the PyTorch forward exactly."""
    h = x
    for l in range(len(weights) - 1):
        h = jnp.tanh(h @ weights[l].T + biases[l][:, 0])
    return h @ weights[-1].T + biases[-1][:, 0]


if __name__ == "__main__":
    # Small shapes consistent with the module: actor MLP with 3 layers.
    num_layers = 3
    batch = 8
    input_dim = 16
    hidden_dim = 32
    output_dim = 1

    key = jax.random.PRNGKey(0)
    key, kx = jax.random.split(key)
    x = jax.random.normal(kx, (batch, input_dim), dtype=jnp.float32)

    weights, biases = init_mlp_actor_params(
        key, num_layers, input_dim, hidden_dim, output_dim
    )

    out = jax.block_until_ready(mlp_actor_forward(x, weights, biases))
    ref = mlp_actor_reference(x, weights, biases)
    assert out.shape == (batch, output_dim)
    assert jnp.allclose(out, ref, atol=1e-4, rtol=1e-4)

    # num_layers == 1 (pure linear) branch.
    w1, b1 = init_mlp_actor_params(
        jax.random.PRNGKey(1), 1, input_dim, hidden_dim, output_dim
    )
    out1 = jax.block_until_ready(mlp_actor_forward(x, w1, b1))
    ref1 = mlp_actor_reference(x, w1, b1)
    assert jnp.allclose(out1, ref1, atol=1e-4, rtol=1e-4)

    # Medium, non-aligned batch: single full-extent block, no padding anywhere.
    x_med = jax.random.normal(jax.random.PRNGKey(2), (1000, input_dim), jnp.float32)
    out_med = jax.block_until_ready(mlp_actor_forward(x_med, weights, biases))
    ref_med = mlp_actor_reference(x_med, weights, biases)
    assert out_med.shape == (1000, output_dim)
    assert jnp.allclose(out_med, ref_med, atol=1e-4, rtol=1e-4)

    # Large, non-tile-multiple batch: exercises the tiled path with >=2
    # parallel grid steps and a masked partial boundary block (no jnp.pad).
    x_big = jax.random.normal(jax.random.PRNGKey(3), (20000, input_dim), jnp.float32)
    out_big = jax.block_until_ready(mlp_actor_forward(x_big, weights, biases))
    ref_big = mlp_actor_reference(x_big, weights, biases)
    assert out_big.shape == (20000, output_dim)
    assert jnp.allclose(out_big, ref_big, atol=1e-4, rtol=1e-4)

    # Forced smaller tile: multi-step grid (5 steps) with a partial last block.
    out_t = jax.block_until_ready(
        mlp_actor_forward(x_big, weights, biases, tile_b=4096)
    )
    assert jnp.allclose(out_t, ref_big, atol=1e-4, rtol=1e-4)

    print("KERNEL_OK")
</pallas_src>

<mosaic_0001>
module attributes {stable_mosaic.version = 11 : i64} {
  func.func @_mlp_kernel(%arg0: i32, %arg1: memref<8x16xf32, #tpu.memory_space<vmem>>, %arg2: memref<32x16xf32, #tpu.memory_space<vmem>>, %arg3: memref<32x1xf32, #tpu.memory_space<vmem>>, %arg4: memref<32x32xf32, #tpu.memory_space<vmem>>, %arg5: memref<32x1xf32, #tpu.memory_space<vmem>>, %arg6: memref<1x32xf32, #tpu.memory_space<vmem>>, %arg7: memref<1x1xf32, #tpu.memory_space<vmem>>, %arg8: memref<1x8xf32, #tpu.memory_space<vmem>>) attributes {dimension_semantics = [#tpu.dimension_semantics<parallel>], iteration_bounds = array<i64: 1>, scalar_prefetch = 0 : i64, scratch_operands = 0 : i64, tpu.core_type = #tpu.core_type<tc>, window_params = [{transform_indices = @transform_0, window_bounds = array<i64: 8, 16>}, {pipeline_mode = #tpu.pipeline_mode<synchronous>, transform_indices = @transform_1, window_bounds = array<i64: 32, 16>}, {pipeline_mode = #tpu.pipeline_mode<synchronous>, transform_indices = @transform_2, window_bounds = array<i64: 32, 1>}, {pipeline_mode = #tpu.pipeline_mode<synchronous>, transform_indices = @transform_3, window_bounds = array<i64: 32, 32>}, {pipeline_mode = #tpu.pipeline_mode<synchronous>, transform_indices = @transform_4, window_bounds = array<i64: 32, 1>}, {pipeline_mode = #tpu.pipeline_mode<synchronous>, transform_indices = @transform_5, window_bounds = array<i64: 1, 32>}, {pipeline_mode = #tpu.pipeline_mode<synchronous>, transform_indices = @transform_6, window_bounds = array<i64: 1, 1>}, {transform_indices = @transform_7, window_bounds = array<i64: 1, 8>}]} {
    %c0 = arith.constant 0 : index
    %c0_0 = arith.constant 0 : index
    %0 = vector.load %arg1[%c0, %c0_0] : memref<8x16xf32, #tpu.memory_space<vmem>>, vector<8x16xf32>
    %c0_1 = arith.constant 0 : index
    %c0_2 = arith.constant 0 : index
    %1 = vector.load %arg2[%c0_1, %c0_2] : memref<32x16xf32, #tpu.memory_space<vmem>>, vector<32x16xf32>
    %c0_3 = arith.constant 0 : index
    %c0_4 = arith.constant 0 : index
    %2 = vector.load %arg3[%c0_3, %c0_4] : memref<32x1xf32, #tpu.memory_space<vmem>>, vector<32x1xf32>
    %cst = arith.constant dense<0.000000e+00> : vector<32x8xf32>
    %3 = tpu.matmul %1, %0, %cst {dimension_numbers = #tpu.dot_dimension_numbers<[1], [1], [0], [0], [0, 0, 1, 0], [], []>} : vector<32x16xf32>, vector<8x16xf32>, vector<32x8xf32> -> vector<32x8xf32>
    %4 = vector.broadcast %2 : vector<32x1xf32> to vector<32x8xf32>
    %5 = arith.addf %3, %4 : vector<32x8xf32>
    %6 = math.tanh %5 : vector<32x8xf32>
    %c0_5 = arith.constant 0 : index
    %c0_6 = arith.constant 0 : index
    %7 = vector.load %arg4[%c0_5, %c0_6] : memref<32x32xf32, #tpu.memory_space<vmem>>, vector<32x32xf32>
    %c0_7 = arith.constant 0 : index
    %c0_8 = arith.constant 0 : index
    %8 = vector.load %arg5[%c0_7, %c0_8] : memref<32x1xf32, #tpu.memory_space<vmem>>, vector<32x1xf32>
    %cst_9 = arith.constant dense<0.000000e+00> : vector<32x8xf32>
    %9 = tpu.matmul %7, %6, %cst_9 {dimension_numbers = #tpu.dot_dimension_numbers<[1], [0], [0], [1], [0, 0, 1, 1], [], []>} : vector<32x32xf32>, vector<32x8xf32>, vector<32x8xf32> -> vector<32x8xf32>
    %10 = vector.broadcast %8 : vector<32x1xf32> to vector<32x8xf32>
    %11 = arith.addf %9, %10 : vector<32x8xf32>
    %12 = math.tanh %11 : vector<32x8xf32>
    %c0_10 = arith.constant 0 : index
    %c0_11 = arith.constant 0 : index
    %13 = vector.load %arg6[%c0_10, %c0_11] : memref<1x32xf32, #tpu.memory_space<vmem>>, vector<1x32xf32>
    %c0_12 = arith.constant 0 : index
    %c0_13 = arith.constant 0 : index
    %14 = vector.load %arg7[%c0_12, %c0_13] : memref<1x1xf32, #tpu.memory_space<vmem>>, vector<1x1xf32>
    %cst_14 = arith.constant dense<0.000000e+00> : vector<1x8xf32>
    %15 = tpu.matmul %13, %12, %cst_14 {dimension_numbers = #tpu.dot_dimension_numbers<[1], [0], [0], [1], [0, 0, 1, 1], [], []>} : vector<1x32xf32>, vector<32x8xf32>, vector<1x8xf32> -> vector<1x8xf32>
    %16 = vector.broadcast %14 : vector<1x1xf32> to vector<1x8xf32>
    %17 = arith.addf %15, %16 : vector<1x8xf32>
    %c0_15 = arith.constant 0 : index
    %c0_16 = arith.constant 0 : index
    %18 = vector.load %arg8[%c0_15, %c0_16] : memref<1x8xf32, #tpu.memory_space<vmem>>, vector<1x8xf32>
    tpu.vector_store %arg8[%c0_15, %c0_16], %17 {strides = array<i32>} : memref<1x8xf32, #tpu.memory_space<vmem>>, vector<1x8xf32>,
    return
  }
  func.func @transform_0(%arg0: i32) -> (i32, i32) {
    %c0_i32 = arith.constant 0 : i32
    %c0_i32_0 = arith.constant 0 : i32
    return %arg0, %c0_i32 : i32, i32
  }
  func.func @transform_1(%arg0: i32) -> (i32, i32) {
    %c0_i32 = arith.constant 0 : i32
    %c0_i32_0 = arith.constant 0 : i32
    %c0_i32_1 = arith.constant 0 : i32
    return %c0_i32, %c0_i32_0 : i32, i32
  }
  func.func @transform_2(%arg0: i32) -> (i32, i32) {
    %c0_i32 = arith.constant 0 : i32
    %c0_i32_0 = arith.constant 0 : i32
    %c0_i32_1 = arith.constant 0 : i32
    return %c0_i32, %c0_i32_0 : i32, i32
  }
  func.func @transform_3(%arg0: i32) -> (i32, i32) {
    %c0_i32 = arith.constant 0 : i32
    %c0_i32_0 = arith.constant 0 : i32
    %c0_i32_1 = arith.constant 0 : i32
    return %c0_i32, %c0_i32_0 : i32, i32
  }
  func.func @transform_4(%arg0: i32) -> (i32, i32) {
    %c0_i32 = arith.constant 0 : i32
    %c0_i32_0 = arith.constant 0 : i32
    %c0_i32_1 = arith.constant 0 : i32
    return %c0_i32, %c0_i32_0 : i32, i32
  }
  func.func @transform_5(%arg0: i32) -> (i32, i32) {
    %c0_i32 = arith.constant 0 : i32
    %c0_i32_0 = arith.constant 0 : i32
    %c0_i32_1 = arith.constant 0 : i32
    return %c0_i32, %c0_i32_0 : i32, i32
  }
  func.func @transform_6(%arg0: i32) -> (i32, i32) {
    %c0_i32 = arith.constant 0 : i32
    %c0_i32_0 = arith.constant 0 : i32
    %c0_i32_1 = arith.constant 0 : i32
    return %c0_i32, %c0_i32_0 : i32, i32
  }
  func.func @transform_7(%arg0: i32) -> (i32, i32) {
    %c0_i32 = arith.constant 0 : i32
    %c0_i32_0 = arith.constant 0 : i32
    return %c0_i32, %arg0 : i32, i32
  }
}

module attributes {stable_mosaic.version = 11 : i64} {
  func.func @_mlp_kernel(%arg0: i32, %arg1: memref<8x16xf32, #tpu.memory_space<vmem>>, %arg2: memref<32x16xf32, #tpu.memory_space<vmem>>, %arg3: memref<32x1xf32, #tpu.memory_space<vmem>>, %arg4: memref<32x32xf32, #tpu.memory_space<vmem>>, %arg5: memref<32x1xf32, #tpu.memory_space<vmem>>, %arg6: memref<1x32xf32, #tpu.memory_space<vmem>>, %arg7: memref<1x1xf32, #tpu.memory_space<vmem>>, %arg8: memref<1x8xf32, #tpu.memory_space<vmem>>) attributes {dimension_semantics = [#tpu.dimension_semantics<parallel>], iteration_bounds = array<i64: 1>, scalar_prefetch = 0 : i64, scratch_operands = 0 : i64, tpu.core_type = #tpu.core_type<tc>, window_params = [{transform_indices = @transform_0, window_bounds = array<i64: 8, 16>}, {pipeline_mode = #tpu.pipeline_mode<synchronous>, transform_indices = @transform_1, window_bounds = array<i64: 32, 16>}, {pipeline_mode = #tpu.pipeline_mode<synchronous>, transform_indices = @transform_2, window_bounds = array<i64: 32, 1>}, {pipeline_mode = #tpu.pipeline_mode<synchronous>, transform_indices = @transform_3, window_bounds = array<i64: 32, 32>}, {pipeline_mode = #tpu.pipeline_mode<synchronous>, transform_indices = @transform_4, window_bounds = array<i64: 32, 1>}, {pipeline_mode = #tpu.pipeline_mode<synchronous>, transform_indices = @transform_5, window_bounds = array<i64: 1, 32>}, {pipeline_mode = #tpu.pipeline_mode<synchronous>, transform_indices = @transform_6, window_bounds = array<i64: 1, 1>}, {transform_indices = @transform_7, window_bounds = array<i64: 1, 8>}]} {
    %c0 = arith.constant 0 : index
    %c0_0 = arith.constant 0 : index
    %0 = vector.load %arg1[%c0, %c0_0] : memref<8x16xf32, #tpu.memory_space<vmem>>, vector<8x16xf32>
    %c0_1 = arith.constant 0 : index
    %c0_2 = arith.constant 0 : index
    %1 = vector.load %arg2[%c0_1, %c0_2] : memref<32x16xf32, #tpu.memory_space<vmem>>, vector<32x16xf32>
    %c0_3 = arith.constant 0 : index
    %c0_4 = arith.constant 0 : index
    %2 = vector.load %arg3[%c0_3, %c0_4] : memref<32x1xf32, #tpu.memory_space<vmem>>, vector<32x1xf32>
    %cst = arith.constant dense<0.000000e+00> : vector<32x8xf32>
    %3 = tpu.matmul %1, %0, %cst {dimension_numbers = #tpu.dot_dimension_numbers<[1], [1], [0], [0], [0, 0, 1, 0], [], []>} : vector<32x16xf32>, vector<8x16xf32>, vector<32x8xf32> -> vector<32x8xf32>
    %4 = vector.broadcast %2 : vector<32x1xf32> to vector<32x8xf32>
    %5 = arith.addf %3, %4 : vector<32x8xf32>
    %6 = math.tanh %5 : vector<32x8xf32>
    %c0_5 = arith.constant 0 : index
    %c0_6 = arith.constant 0 : index
    %7 = vector.load %arg4[%c0_5, %c0_6] : memref<32x32xf32, #tpu.memory_space<vmem>>, vector<32x32xf32>
    %c0_7 = arith.constant 0 : index
    %c0_8 = arith.constant 0 : index
    %8 = vector.load %arg5[%c0_7, %c0_8] : memref<32x1xf32, #tpu.memory_space<vmem>>, vector<32x1xf32>
    %cst_9 = arith.constant dense<0.000000e+00> : vector<32x8xf32>
    %9 = tpu.matmul %7, %6, %cst_9 {dimension_numbers = #tpu.dot_dimension_numbers<[1], [0], [0], [1], [0, 0, 1, 1], [], []>} : vector<32x32xf32>, vector<32x8xf32>, vector<32x8xf32> -> vector<32x8xf32>
    %10 = vector.broadcast %8 : vector<32x1xf32> to vector<32x8xf32>
    %11 = arith.addf %9, %10 : vector<32x8xf32>
    %12 = math.tanh %11 : vector<32x8xf32>
    %c0_10 = arith.constant 0 : index
    %c0_11 = arith.constant 0 : index
    %13 = vector.load %arg6[%c0_10, %c0_11] : memref<1x32xf32, #tpu.memory_space<vmem>>, vector<1x32xf32>
    %c0_12 = arith.constant 0 : index
    %c0_13 = arith.constant 0 : index
    %14 = vector.load %arg7[%c0_12, %c0_13] : memref<1x1xf32, #tpu.memory_space<vmem>>, vector<1x1xf32>
    %cst_14 = arith.constant dense<0.000000e+00> : vector<1x8xf32>
    %15 = tpu.matmul %13, %12, %cst_14 {dimension_numbers = #tpu.dot_dimension_numbers<[1], [0], [0], [1], [0, 0, 1, 1], [], []>} : vector<1x32xf32>, vector<32x8xf32>, vector<1x8xf32> -> vector<1x8xf32>
    %16 = vector.broadcast %14 : vector<1x1xf32> to vector<1x8xf32>
    %17 = arith.addf %15, %16 : vector<1x8xf32>
    %c0_15 = arith.constant 0 : index
    %c0_16 = arith.constant 0 : index
    %18 = vector.load %arg8[%c0_15, %c0_16] : memref<1x8xf32, #tpu.memory_space<vmem>>, vector<1x8xf32>
    tpu.vector_store %arg8[%c0_15, %c0_16], %17 {strides = array<i32>} : memref<1x8xf32, #tpu.memory_space<vmem>>, vector<1x8xf32>,
    return
  }
  func.func @transform_0(%arg0: i32) -> (i32, i32) {
    %c0_i32 = arith.constant 0 : i32
    %c0_i32_0 = arith.constant 0 : i32
    return %arg0, %c0_i32 : i32, i32
  }
  func.func @transform_1(%arg0: i32) -> (i32, i32) {
    %c0_i32 = arith.constant 0 : i32
    %c0_i32_0 = arith.constant 0 : i32
    %c0_i32_1 = arith.constant 0 : i32
    return %c0_i32, %c0_i32_0 : i32, i32
  }
  func.func @transform_2(%arg0: i32) -> (i32, i32) {
    %c0_i32 = arith.constant 0 : i32
    %c0_i32_0 = arith.constant 0 : i32
    %c0_i32_1 = arith.constant 0 : i32
    return %c0_i32, %c0_i32_0 : i32, i32
  }
  func.func @transform_3(%arg0: i32) -> (i32, i32) {
    %c0_i32 = arith.constant 0 : i32
    %c0_i32_0 = arith.constant 0 : i32
    %c0_i32_1 = arith.constant 0 : i32
    return %c0_i32, %c0_i32_0 : i32, i32
  }
  func.func @transform_4(%arg0: i32) -> (i32, i32) {
    %c0_i32 = arith.constant 0 : i32
    %c0_i32_0 = arith.constant 0 : i32
    %c0_i32_1 = arith.constant 0 : i32
    return %c0_i32, %c0_i32_0 : i32, i32
  }
  func.func @transform_5(%arg0: i32) -> (i32, i32) {
    %c0_i32 = arith.constant 0 : i32
    %c0_i32_0 = arith.constant 0 : i32
    %c0_i32_1 = arith.constant 0 : i32
    return %c0_i32, %c0_i32_0 : i32, i32
  }
  func.func @transform_6(%arg0: i32) -> (i32, i32) {
    %c0_i32 = arith.constant 0 : i32
    %c0_i32_0 = arith.constant 0 : i32
    %c0_i32_1 = arith.constant 0 : i32
    return %c0_i32, %c0_i32_0 : i32, i32
  }
  func.func @transform_7(%arg0: i32) -> (i32, i32) {
    %c0_i32 = arith.constant 0 : i32
    %c0_i32_0 = arith.constant 0 : i32
    return %c0_i32, %arg0 : i32, i32
  }
}

</mosaic_0001>

<bundles_post_ra>
// kernel: tpu_custom_call.1
= control target key start
LH: loop header
LB: loop body
LE: loop exit
PB: predicated region body
PF: predicated region fallthrough
CT: control target
= control target key end

     0   :  { %s613_s0 = inlined_call_operand.vmem [shape: f32[8,16], index: 0, kind: input, shape index: {}]   ;;  %s614_s1 = inlined_call_operand.vmem [shape: f32[32,16], index: 1, kind: input, shape index: {}]   ;;  %s615_s2 = inlined_call_operand.vmem [shape: f32[32,1], index: 2, kind: input, shape index: {}]   ;;  %s616_s3 = inlined_call_operand.vmem [shape: f32[32,32], index: 3, kind: input, shape index: {}]   ;;  %s617_s4 = inlined_call_operand.vmem [shape: f32[32,1], index: 4, kind: input, shape index: {}]   ;;  %s618_s5 = inlined_call_operand.vmem [shape: f32[1,32], index: 5, kind: input, shape index: {}]   ;;  %s619_s6 = inlined_call_operand.<no memory space> [shape: f32[1,1], index: 6, kind: input, shape index: {}]   ;;  %s620_s7 = inlined_call_operand.hbm [shape: f32[1,8], index: 7, kind: output, shape index: {}]  }
   0x1   :  { %v12_v0 = vstv %s619_s6 }
   0x2   :  { %13 = vst [vmem:[#allocation2] sm:$0x1] %v12_v0 }
   0x3   :  { %v29_v1 = vld [vmem:[%s613_s0] sm:$0xff]  ;;  %vm58_vm0 = vcmask 130048   ;;  %v37_v3 = vld [vmem:[%s615_s2 + $0x18] sm:$0xff]  ;;  %v31_v4 = vld [vmem:[%s614_s1 + $0x8] sm:$0xff]  ;;  %v498_v5 = vmov 0  }
   0x4   :  { %v30_v2 = vld [vmem:[%s614_s1] sm:$0xff]  ;;  %421 = vmatprep.subr.msk.mxu0 %vm58_vm0, %v29_v1  ;;  %458 = vset.pattern.permute.xlu0 %v498_v5  ;;  %v35_v6 = vld [vmem:[%s615_s2 + $0x8] sm:$0xff]  ;;  %v32_v7 = vld [vmem:[%s614_s1 + $0x10] sm:$0xff] }
   0x5   :  { %423 = vmatprep.mubr.msk.f32.mxu0 %vm58_vm0, %v30_v2  ;;  %422 = vmatpush3.xpose.msk.msra.mxu0 %vm58_vm0, %v29_v1  ;;  %v36_v8 = vld [vmem:[%s615_s2 + $0x10] sm:$0xff] }
   0x6   :  { %55 = vperm.xlu0 %458, %v37_v3   ;;  %459 = vset.pattern.permute.xlu1 %v498_v5 }
   0x7   :  { %45 = vperm.xlu1 %459, %v35_v6  }
   0x8   :  { %14 = vsyncpa [#allocation4], 0  ;;  %424 = vmatmul.mubr.msk.f32.vlgmr.msra.gmra.mxu0 %vm58_vm0, %v31_v4  ;;  %v34_v9 = vld [vmem:[%s615_s2] sm:$0xff]  ;;  %v33_v10 = vld [vmem:[%s614_s1 + $0x18] sm:$0xff]  ;;  %vm191_vm1 = vcmask 261120   ;;  %v499_v36 = vmov 0.0   ;;  %v300_v54 = vlaneseq }
   0x9   :  { %426 = vmatprep.mubr.msk.f32.mxu0 %vm58_vm0, %v32_v7  ;;  %v170_v11 = vld [vmem:[%s617_s4 + $0x18] sm:$0xff]  ;;  %v169_v12 = vld [vmem:[%s617_s4 + $0x10] sm:$0xff]  ;;  %v168_v13 = vld [vmem:[%s617_s4 + $0x8] sm:$0xff]  ;;  %443 = vmatprep.subr.mxu0 %v499_v36  ;;  %vm500_vm2 = vmmov 0   ;;  %s501_s9 = smov [#allocation3]   ;;  %vm377_vm3 = vcmask 57344  }
   0xa   :  { %50 = vperm.xlu0 %458, %v36_v8   ;;  %v167_v14 = vld [vmem:[%s617_s4] sm:$0xff]  ;;  %v164_v33 = vld [vmem:[%s616_s3 + $0x8] sm:$0xff]  ;;  %v165_v34 = vld [vmem:[%s616_s3 + $0x10] sm:$0xff]  ;;  %v301_v55 = vshrl.u32 %v300_v54, 7  ;;  %s385_s0 = sshll.u32 %s501_s9, 4  ;;  %s386_s0 = int_to_ptr.vmem [resolvable:$true] %s385_s0 }
   0xb   :  { %40 = vperm.xlu1 %459, %v34_v9   ;;  %v294_v15 = vld [vmem:[#allocation2] sm:$0x1]  ;;  %v166_v35 = vld [vmem:[%s616_s3 + $0x18] sm:$0xff]  ;;  %s476_s10 = scalar_lea.vmem %s386_s0, 16  ;;  %p481_p1 = scmp.lt.s32.totalorder %s386_s0, %s386_s0 }
   0xc   :  { %427 = vmatmul.mubr.msk.f32.gmra.mxu0 %vm58_vm0, %v33_v10  ;;  %v163_v16 = vld [vmem:[%s616_s3] sm:$0xff]  ;;  %v302_v56 = vsub.s32 0, %v301_v55  ;;  %p477_p0 = scmp.ne.s32.totalorder %s386_s0, %s476_s10 }
   0xd   :  { %437 = vmatprep.mubr.msk.f32.mxu1 %vm191_vm1, %v163_v16  ;;  %451 = vmatprep.mubr.msk.f32.mxu0 %vm500_vm2, %v499_v36  ;;  %v293_v52 = vld [vmem:[%s618_s5] sm:$0x1]  ;;  %s480_s5 = scalar_lea.vmem %s386_s0, 32 }
   0xe   :  { %188 = vperm.xlu0 %458, %v170_v11   ;;  %p482_p2 = scmp.lt.s32.totalorder %s480_s5, %s476_s10 }
   0xf   :  { %183 = vperm.xlu1 %459, %v169_v12  }
  0x10   :  { %p483_p3 = por %p482_p2, %p481_p1 }
  0x12   :  { %178 = vperm.xlu0 %458, %v168_v13   ;;  %p484_p4 = pnand %p483_p3, %p477_p0 }
  0x13   :  { %173 = vperm.xlu1 %459, %v167_v14  }
  0x16   :  { %297 = vperm.xlu0 %458, %v294_v15  }
  0x81   :  { %v56_v17 = vpop.permute.xlu0 %55 }
  0x82   :  { %v46_v19 = vpop.permute.xlu1 %45 }
  0x85   :  { %v51_v23 = vpop.permute.xlu0 %50 }
  0x86   :  { %v41_v27 = vpop.permute.xlu1 %40 }
  0x89   :  { %v189_v37 = vpop.permute.xlu0 %188 }
  0x8a   :  { %v184_v39 = vpop.permute.xlu1 %183 }
  0x8d   :  { %v179_v43 = vpop.permute.xlu0 %178 }
  0x8e   :  { %v174_v47 = vpop.permute.xlu1 %173 }
  0x91   :  { %v298_v57 = vpop.permute.xlu0 %297 }
  0x92   :  { %v303_v58 = vrot.slane %v298_v57, %v302_v56 }
  0xc8   :  { %v425_v18 = vpop.f32.mrf.mxu0 }
  0xc9   :  { %v146_v25 = vadd.f32 %v425_v18, %v46_v19 }
  0xca   :  { %v140_v20 = vpop.f32.mrf.mxu0 }
  0xcb   :  { %v141_v28 = vadd.f32 %v140_v20, %v41_v27 }
  0xcc   :  { %v428_v21 = vpop.f32.mrf.mxu0 }
  0xcd   :  { %v156_v22 = vadd.f32 %v428_v21, %v56_v17 }
  0xce   :  { %v150_v24 = vpop.f32.mrf.mxu0 }
  0xcf   :  { %460 = vtanh.f32 %v156_v22  ;;  %v151_v26 = vadd.f32 %v150_v24, %v51_v23 }
  0xd1   :  { %462 = vtanh.f32 %v151_v26 }
  0xd2   :  { %464 = vtanh.f32 %v146_v25 }
  0xd3   :  { %466 = vtanh.f32 %v141_v28 }
  0xdc   :  { %v461_v29 = vpop.eup %460 }
  0xdd   :  { %429 = vmatprep.subr.mxu1 %v461_v29 }
  0xde   :  { %v463_v30 = vpop.eup %462  ;;  %430 = vmatpush3.msra.mxu1 %v461_v29 }
  0xdf   :  { %431 = vmatprep.subr.mxu1 %v463_v30  ;;  %v465_v31 = vpop.eup %464 }
  0xe0   :  { %432 = vmatpush3.msra.mxu1 %v463_v30  ;;  %v467_v32 = vpop.eup %466 }
  0xe1   :  { %433 = vmatprep.subr.mxu1 %v465_v31 }
  0xe2   :  { %434 = vmatpush3.msra.mxu1 %v465_v31 }
  0xe3   :  { %435 = vmatprep.subr.mxu1 %v467_v32 }
  0xe4   :  { %436 = vmatpush3.msra.mxu1 %v467_v32 }
  0xe5   :  { %438 = vmatmul.mubr.msk.f32.vlgmr.msra.gmra.mxu1 %vm191_vm1, %v164_v33 }
  0xe6   :  { %440 = vmatprep.mubr.msk.f32.mxu1 %vm191_vm1, %v165_v34 }
  0xe9   :  { %441 = vmatmul.mubr.msk.f32.gmra.mxu1 %vm191_vm1, %v166_v35 }
 0x1a5   :  { %v439_v38 = vpop.f32.mrf.mxu1 }
 0x1a6   :  { %v276_v45 = vadd.f32 %v439_v38, %v179_v43 }
 0x1a7   :  { %v270_v40 = vpop.f32.mrf.mxu1 }
 0x1a8   :  { %v271_v48 = vadd.f32 %v270_v40, %v174_v47 }
 0x1a9   :  { %v442_v41 = vpop.f32.mrf.mxu1 }
 0x1aa   :  { %v286_v42 = vadd.f32 %v442_v41, %v189_v37 }
 0x1ab   :  { %v280_v44 = vpop.f32.mrf.mxu1 }
 0x1ac   :  { %468 = vtanh.f32 %v286_v42  ;;  %v281_v46 = vadd.f32 %v280_v44, %v184_v39 }
 0x1ae   :  { %470 = vtanh.f32 %v281_v46 }
 0x1af   :  { %472 = vtanh.f32 %v276_v45 }
 0x1b0   :  { %474 = vtanh.f32 %v271_v48 }
 0x1b9   :  { %v469_v49 = vpop.eup %468 }
 0x1ba   :  { %444 = vmatpush3.msra.mxu0 %v469_v49 }
 0x1bb   :  { %v471_v50 = vpop.eup %470  ;;  %445 = vmatprep.subr.mxu0 %v499_v36 }
 0x1bc   :  { %446 = vmatpush3.msra.mxu0 %v471_v50  ;;  %v473_v51 = vpop.eup %472 }
 0x1bd   :  { %447 = vmatprep.subr.mxu0 %v499_v36  ;;  %v475_v53 = vpop.eup %474 }
 0x1be   :  { %448 = vmatpush3.msra.mxu0 %v473_v51 }
 0x1bf   :  { %449 = vmatprep.subr.mxu0 %v499_v36 }
 0x1c0   :  { %450 = vmatpush3.msra.mxu0 %v475_v53 }
 0x1c1   :  { %452 = vmatmul.mubr.msk.f32.vlgmr.msra.gmra.mxu0 %vm191_vm1, %v293_v52 }
 0x281   :  { %v373_v59 = vpop.f32.mrf.mxu0 }
 0x282   :  { %v374_v60 = vadd.f32 %v373_v59, %v303_v58 }
 0x283   :  { %v453_v61 = vpop.f32.mrf.mxu0 }
 0x284   :  { %378 = vst.msk [vmem:[#allocation3] sm:$0x1] %vm377_vm3, %v374_v60 }
 0x285   :  { %487 = shalt.err (!%p484_p4)
}
 0x286   :  { %388 = dma.vmem_to_hbm [thread:$0]  %s386_s0, 16, %s620_s7, [#allocation4]  }
 0x287   :  { %496 = dma.done.wait [#allocation4], 16  }
 0x288   :  { %497 = vsyncadd [#allocation4], 4294967280 }
 0x289   :  { %392 = vsyncpa [#allocation4], 1 }

// kernel: tpu_custom_call.1
= control target key start
LH: loop header
LB: loop body
LE: loop exit
PB: predicated region body
PF: predicated region fallthrough
CT: control target
= control target key end

     0   :  { %s613_s0 = inlined_call_operand.vmem [shape: f32[8,16], index: 0, kind: input, shape index: {}]   ;;  %s614_s1 = inlined_call_operand.vmem [shape: f32[32,16], index: 1, kind: input, shape index: {}]   ;;  %s615_s2 = inlined_call_operand.vmem [shape: f32[32,1], index: 2, kind: input, shape index: {}]   ;;  %s616_s3 = inlined_call_operand.vmem [shape: f32[32,32], index: 3, kind: input, shape index: {}]   ;;  %s617_s4 = inlined_call_operand.vmem [shape: f32[32,1], index: 4, kind: input, shape index: {}]   ;;  %s618_s5 = inlined_call_operand.vmem [shape: f32[1,32], index: 5, kind: input, shape index: {}]   ;;  %s619_s6 = inlined_call_operand.<no memory space> [shape: f32[1,1], index: 6, kind: input, shape index: {}]   ;;  %s620_s7 = inlined_call_operand.hbm [shape: f32[1,8], index: 7, kind: output, shape index: {}]  }
   0x1   :  { %v12_v0 = vstv %s619_s6 }
   0x2   :  { %13 = vst [vmem:[#allocation2] sm:$0x1] %v12_v0 }
   0x3   :  { %v29_v1 = vld [vmem:[%s613_s0] sm:$0xff]  ;;  %vm58_vm0 = vcmask 130048   ;;  %v37_v3 = vld [vmem:[%s615_s2 + $0x18] sm:$0xff]  ;;  %v31_v4 = vld [vmem:[%s614_s1 + $0x8] sm:$0xff]  ;;  %v498_v5 = vmov 0  }
   0x4   :  { %v30_v2 = vld [vmem:[%s614_s1] sm:$0xff]  ;;  %421 = vmatprep.subr.msk.mxu0 %vm58_vm0, %v29_v1  ;;  %458 = vset.pattern.permute.xlu0 %v498_v5  ;;  %v35_v6 = vld [vmem:[%s615_s2 + $0x8] sm:$0xff]  ;;  %v32_v7 = vld [vmem:[%s614_s1 + $0x10] sm:$0xff] }
   0x5   :  { %423 = vmatprep.mubr.msk.f32.mxu0 %vm58_vm0, %v30_v2  ;;  %422 = vmatpush3.xpose.msk.msra.mxu0 %vm58_vm0, %v29_v1  ;;  %v36_v8 = vld [vmem:[%s615_s2 + $0x10] sm:$0xff] }
   0x6   :  { %55 = vperm.xlu0 %458, %v37_v3   ;;  %459 = vset.pattern.permute.xlu1 %v498_v5 }
   0x7   :  { %45 = vperm.xlu1 %459, %v35_v6  }
   0x8   :  { %14 = vsyncpa [#allocation4], 0  ;;  %424 = vmatmul.mubr.msk.f32.vlgmr.msra.gmra.mxu0 %vm58_vm0, %v31_v4  ;;  %v34_v9 = vld [vmem:[%s615_s2] sm:$0xff]  ;;  %v33_v10 = vld [vmem:[%s614_s1 + $0x18] sm:$0xff]  ;;  %vm191_vm1 = vcmask 261120   ;;  %v499_v36 = vmov 0.0   ;;  %v300_v54 = vlaneseq }
   0x9   :  { %426 = vmatprep.mubr.msk.f32.mxu0 %vm58_vm0, %v32_v7  ;;  %v170_v11 = vld [vmem:[%s617_s4 + $0x18] sm:$0xff]  ;;  %v169_v12 = vld [vmem:[%s617_s4 + $0x10] sm:$0xff]  ;;  %v168_v13 = vld [vmem:[%s617_s4 + $0x8] sm:$0xff]  ;;  %443 = vmatprep.subr.mxu0 %v499_v36  ;;  %vm500_vm2 = vmmov 0   ;;  %s501_s9 = smov [#allocation3]   ;;  %vm377_vm3 = vcmask 57344  }
   0xa   :  { %50 = vperm.xlu0 %458, %v36_v8   ;;  %v167_v14 = vld [vmem:[%s617_s4] sm:$0xff]  ;;  %v164_v33 = vld [vmem:[%s616_s3 + $0x8] sm:$0xff]  ;;  %v165_v34 = vld [vmem:[%s616_s3 + $0x10] sm:$0xff]  ;;  %v301_v55 = vshrl.u32 %v300_v54, 7  ;;  %s385_s0 = sshll.u32 %s501_s9, 4  ;;  %s386_s0 = int_to_ptr.vmem [resolvable:$true] %s385_s0 }
   0xb   :  { %40 = vperm.xlu1 %459, %v34_v9   ;;  %v294_v15 = vld [vmem:[#allocation2] sm:$0x1]  ;;  %v166_v35 = vld [vmem:[%s616_s3 + $0x18] sm:$0xff]  ;;  %s476_s10 = scalar_lea.vmem %s386_s0, 16  ;;  %p481_p1 = scmp.lt.s32.totalorder %s386_s0, %s386_s0 }
   0xc   :  { %427 = vmatmul.mubr.msk.f32.gmra.mxu0 %vm58_vm0, %v33_v10  ;;  %v163_v16 = vld [vmem:[%s616_s3] sm:$0xff]  ;;  %v302_v56 = vsub.s32 0, %v301_v55  ;;  %p477_p0 = scmp.ne.s32.totalorder %s386_s0, %s476_s10 }
   0xd   :  { %437 = vmatprep.mubr.msk.f32.mxu1 %vm191_vm1, %v163_v16  ;;  %451 = vmatprep.mubr.msk.f32.mxu0 %vm500_vm2, %v499_v36  ;;  %v293_v52 = vld [vmem:[%s618_s5] sm:$0x1]  ;;  %s480_s5 = scalar_lea.vmem %s386_s0, 32 }
   0xe   :  { %188 = vperm.xlu0 %458, %v170_v11   ;;  %p482_p2 = scmp.lt.s32.totalorder %s480_s5, %s476_s10 }
   0xf   :  { %183 = vperm.xlu1 %459, %v169_v12  }
  0x10   :  { %p483_p3 = por %p482_p2, %p481_p1 }
  0x12   :  { %178 = vperm.xlu0 %458, %v168_v13   ;;  %p484_p4 = pnand %p483_p3, %p477_p0 }
  0x13   :  { %173 = vperm.xlu1 %459, %v167_v14  }
  0x16   :  { %297 = vperm.xlu0 %458, %v294_v15  }
  0x81   :  { %v56_v17 = vpop.permute.xlu0 %55 }
  0x82   :  { %v46_v19 = vpop.permute.xlu1 %45 }
  0x85   :  { %v51_v23 = vpop.permute.xlu0 %50 }
  0x86   :  { %v41_v27 = vpop.permute.xlu1 %40 }
  0x89   :  { %v189_v37 = vpop.permute.xlu0 %188 }
  0x8a   :  { %v184_v39 = vpop.permute.xlu1 %183 }
  0x8d   :  { %v179_v43 = vpop.permute.xlu0 %178 }
  0x8e   :  { %v174_v47 = vpop.permute.xlu1 %173 }
  0x91   :  { %v298_v57 = vpop.permute.xlu0 %297 }
  0x92   :  { %v303_v58 = vrot.slane %v298_v57, %v302_v56 }
  0xc8   :  { %v425_v18 = vpop.f32.mrf.mxu0 }
  0xc9   :  { %v146_v25 = vadd.f32 %v425_v18, %v46_v19 }
  0xca   :  { %v140_v20 = vpop.f32.mrf.mxu0 }
  0xcb   :  { %v141_v28 = vadd.f32 %v140_v20, %v41_v27 }
  0xcc   :  { %v428_v21 = vpop.f32.mrf.mxu0 }
  0xcd   :  { %v156_v22 = vadd.f32 %v428_v21, %v56_v17 }
  0xce   :  { %v150_v24 = vpop.f32.mrf.mxu0 }
  0xcf   :  { %460 = vtanh.f32 %v156_v22  ;;  %v151_v26 = vadd.f32 %v150_v24, %v51_v23 }
  0xd1   :  { %462 = vtanh.f32 %v151_v26 }
  0xd2   :  { %464 = vtanh.f32 %v146_v25 }
  0xd3   :  { %466 = vtanh.f32 %v141_v28 }
  0xdc   :  { %v461_v29 = vpop.eup %460 }
  0xdd   :  { %429 = vmatprep.subr.mxu1 %v461_v29 }
  0xde   :  { %v463_v30 = vpop.eup %462  ;;  %430 = vmatpush3.msra.mxu1 %v461_v29 }
  0xdf   :  { %431 = vmatprep.subr.mxu1 %v463_v30  ;;  %v465_v31 = vpop.eup %464 }
  0xe0   :  { %432 = vmatpush3.msra.mxu1 %v463_v30  ;;  %v467_v32 = vpop.eup %466 }
  0xe1   :  { %433 = vmatprep.subr.mxu1 %v465_v31 }
  0xe2   :  { %434 = vmatpush3.msra.mxu1 %v465_v31 }
  0xe3   :  { %435 = vmatprep.subr.mxu1 %v467_v32 }
  0xe4   :  { %436 = vmatpush3.msra.mxu1 %v467_v32 }
  0xe5   :  { %438 = vmatmul.mubr.msk.f32.vlgmr.msra.gmra.mxu1 %vm191_vm1, %v164_v33 }
  0xe6   :  { %440 = vmatprep.mubr.msk.f32.mxu1 %vm191_vm1, %v165_v34 }
  0xe9   :  { %441 = vmatmul.mubr.msk.f32.gmra.mxu1 %vm191_vm1, %v166_v35 }
 0x1a5   :  { %v439_v38 = vpop.f32.mrf.mxu1 }
 0x1a6   :  { %v276_v45 = vadd.f32 %v439_v38, %v179_v43 }
 0x1a7   :  { %v270_v40 = vpop.f32.mrf.mxu1 }
 0x1a8   :  { %v271_v48 = vadd.f32 %v270_v40, %v174_v47 }
 0x1a9   :  { %v442_v41 = vpop.f32.mrf.mxu1 }
 0x1aa   :  { %v286_v42 = vadd.f32 %v442_v41, %v189_v37 }
 0x1ab   :  { %v280_v44 = vpop.f32.mrf.mxu1 }
 0x1ac   :  { %468 = vtanh.f32 %v286_v42  ;;  %v281_v46 = vadd.f32 %v280_v44, %v184_v39 }
 0x1ae   :  { %470 = vtanh.f32 %v281_v46 }
 0x1af   :  { %472 = vtanh.f32 %v276_v45 }
 0x1b0   :  { %474 = vtanh.f32 %v271_v48 }
 0x1b9   :  { %v469_v49 = vpop.eup %468 }
 0x1ba   :  { %444 = vmatpush3.msra.mxu0 %v469_v49 }
 0x1bb   :  { %v471_v50 = vpop.eup %470  ;;  %445 = vmatprep.subr.mxu0 %v499_v36 }
 0x1bc   :  { %446 = vmatpush3.msra.mxu0 %v471_v50  ;;  %v473_v51 = vpop.eup %472 }
 0x1bd   :  { %447 = vmatprep.subr.mxu0 %v499_v36  ;;  %v475_v53 = vpop.eup %474 }
 0x1be   :  { %448 = vmatpush3.msra.mxu0 %v473_v51 }
 0x1bf   :  { %449 = vmatprep.subr.mxu0 %v499_v36 }
 0x1c0   :  { %450 = vmatpush3.msra.mxu0 %v475_v53 }
 0x1c1   :  { %452 = vmatmul.mubr.msk.f32.vlgmr.msra.gmra.mxu0 %vm191_vm1, %v293_v52 }
 0x281   :  { %v373_v59 = vpop.f32.mrf.mxu0 }
 0x282   :  { %v374_v60 = vadd.f32 %v373_v59, %v303_v58 }
 0x283   :  { %v453_v61 = vpop.f32.mrf.mxu0 }
 0x284   :  { %378 = vst.msk [vmem:[#allocation3] sm:$0x1] %vm377_vm3, %v374_v60 }
 0x285   :  { %487 = shalt.err (!%p484_p4)
}
 0x286   :  { %388 = dma.vmem_to_hbm [thread:$0]  %s386_s0, 16, %s620_s7, [#allocation4]  }
 0x287   :  { %496 = dma.done.wait [#allocation4], 16  }
 0x288   :  { %497 = vsyncadd [#allocation4], 4294967280 }
 0x289   :  { %392 = vsyncpa [#allocation4], 1 }

</bundles_post_ra>
